<compile_context>
chip_gen: v6e
topology: v6e:2x2x1
jax: 0.10.0
libtpu: 0.0.40
codegen_flags: <defaults>
</compile_context>

<pallas_src>
import functools

import jax
import jax.numpy as jnp
from jax import lax
from jax.experimental import pallas as pl
from jax.experimental.pallas import tpu as pltpu

BN_EPS = 1e-5
C_IN = 3
C_OUT = 16
KH = KW = 3
K_RAW = C_IN * KH * KW          # 27
K_PAD = 32                      # contraction dim padded to the sublane granule
LANE_BUDGET = 2048              # max fused B*S_pad lanes per grid step
OUT_VMEM_BUDGET = 16 * 1024 * 1024   # resident conv-output cache budget (bytes)


def _round_up(x, m):
    return (x + m - 1) // m * m


def _fused_conv_bn_relu_kernel(masks_ref, gamma_ref, beta_ref, w_ref, x_ref,
                               o_ref, sum_ref, ssq_ref, *,
                               H, W, B, S_pad, count):
    """One grid step: conv for B images -> stash into the resident output cache
    and accumulate per-channel (sum, sum^2); the last step applies BN + ReLU."""
    nb = pl.program_id(0)
    S = H * W
    Lb = B * S_pad
    pad = S_pad - S

    @pl.when(nb == 0)
    def _init():
        sum_ref[...] = jnp.zeros_like(sum_ref)
        ssq_ref[...] = jnp.zeros_like(ssq_ref)

    # ---- build the (K_PAD, B*S_pad) patch matrix as a single value ----------
    # Row order: r = (kh*KW + kw)*C_IN + ci (matches w_mat construction below).
    mask_l = masks_ref[0:1, :]          # (1, Lb): zero where w == 0
    mask_r = masks_ref[1:2, :]          # (1, Lb): zero where w == W-1
    lane_tail = jnp.zeros((C_IN, pad), jnp.float32) if pad else None

    rows = []
    for kh in range(KH):
        for kw in range(KW):
            off = kh * W + kw
            pieces = []
            for b in range(B):
                pieces.append(x_ref[b, :, off:off + S])   # (C_IN, S) static slice
                if pad:
                    pieces.append(lane_tail)              # lane-dense padding
            tap = pieces[0] if len(pieces) == 1 else jnp.concatenate(pieces, axis=1)
            if kw == 0:
                tap = tap * mask_l
            elif kw == KW - 1:
                tap = tap * mask_r
            rows.append(tap)
    rows.append(jnp.zeros((K_PAD - K_RAW, Lb), jnp.float32))     # zero pad rows
    patch = jnp.concatenate(rows, axis=0).astype(jnp.bfloat16)   # (K_PAD, Lb)

    # ---- weights-stationary bf16 MXU matmul with f32 accumulation -----------
    conv = jnp.dot(w_ref[...], patch,
                   preferred_element_type=jnp.float32)           # (C_OUT, Lb)

    # ---- batch-norm statistics (padded lanes contribute exactly zero) -------
    sum_ref[...] += jnp.sum(conv, axis=1, keepdims=True)
    ssq_ref[...] += jnp.sum(conv * conv, axis=1, keepdims=True)

    # ---- stash raw conv into the resident (N, C_OUT, S_pad) output cache ----
    for b in range(B):
        idx = nb * B + b
        o_ref[pl.ds(idx, 1), :, :] = conv[:, b * S_pad:(b + 1) * S_pad][None, :, :]

    # ---- epilogue: training-mode BN (biased batch variance) + ReLU ----------
    @pl.when(nb == pl.num_programs(0) - 1)
    def _finalize():
        inv_n = 1.0 / count
        mean = sum_ref[...] * inv_n                              # (C_OUT, 1)
        var = ssq_ref[...] * inv_n - mean * mean                 # biased variance
        inv_std = lax.rsqrt(var + BN_EPS)
        scale = gamma_ref[...] * inv_std                         # (C_OUT, 1)
        bias = beta_ref[...] - mean * scale                      # (C_OUT, 1)
        y = o_ref[...] * scale.reshape(1, C_OUT, 1) + bias.reshape(1, C_OUT, 1)
        o_ref[...] = jnp.maximum(y, 0.0)


@jax.jit
def model1_forward(x_nchw, conv_w, gamma, beta):
    """x_nchw: (N, 3, H, W) f32. conv_w: (16, 3, 3, 3). Returns (N, 16, H, W) f32."""
    N, C_in, H, W = x_nchw.shape
    assert C_in == C_IN
    S = H * W
    S_pad = _round_up(S, 128)           # keep output stores lane-dense
    Sp = (H + 2) * W + 2
    f32 = jnp.float32

    # Fold B images per grid step into the matmul lane axis; B must divide N
    # and respect the per-step lane budget (sized for v7x VMEM/vregs too).
    B = 1
    for b in range(1, N + 1):
        if N % b == 0 and b * S_pad <= LANE_BUDGET:
            B = b
    num_blocks = N // B

    # The merged single-pass kernel keeps the whole conv output resident in VMEM.
    assert N * C_OUT * S_pad * 4 <= OUT_VMEM_BUDGET, \
        "batch conv output exceeds VMEM budget (see TODO: two-pass fallback)"

    # --- glue (tiny, one-time): flat-pad the input; no 9x im2col blowup in HBM ---
    xh = jnp.pad(x_nchw, ((0, 0), (0, 0), (1, 1), (0, 0)))        # pad H
    xf = xh.reshape(N, C_IN, (H + 2) * W)                         # free reshape
    xf = jnp.pad(xf, ((0, 0), (0, 0), (1, 1))).astype(f32)        # 1 zero at each flat end

    # weight: (C_OUT, C_IN, 3, 3) -> (C_OUT, 27) in (kh, kw, ci) column order
    # -> pad to 32 -> bf16 (MXU-native; accumulation stays f32).
    w_mat = jnp.transpose(conv_w, (0, 2, 3, 1)).reshape(C_OUT, K_RAW)
    w_mat = jnp.pad(w_mat, ((0, 0), (0, K_PAD - K_RAW))).astype(jnp.bfloat16)

    gamma2 = gamma.reshape(C_OUT, 1).astype(f32)
    beta2 = beta.reshape(C_OUT, 1).astype(f32)

    # W-boundary masks, hoisted out of the kernel (resident VMEM input).
    wpos = jnp.arange(S, dtype=jnp.int32) % W
    mask_l = jnp.pad((wpos != 0).astype(f32), (0, S_pad - S), constant_values=1.0)
    mask_r = jnp.pad((wpos != W - 1).astype(f32), (0, S_pad - S), constant_values=1.0)
    masks = jnp.stack([jnp.tile(mask_l, (B,)), jnp.tile(mask_r, (B,))], axis=0)  # (2, B*S_pad)

    kernel = functools.partial(_fused_conv_bn_relu_kernel,
                               H=H, W=W, B=B, S_pad=S_pad, count=float(N * S))

    out_flat = pl.pallas_call(
        kernel,
        out_shape=jax.ShapeDtypeStruct((N, C_OUT, S_pad), f32),
        grid_spec=pltpu.PrefetchScalarGridSpec(
            num_scalar_prefetch=0,
            grid=(num_blocks,),
            in_specs=[
                pl.BlockSpec((2, B * S_pad), lambda n: (0, 0)),       # masks  (resident)
                pl.BlockSpec((C_OUT, 1), lambda n: (0, 0)),           # gamma  (resident)
                pl.BlockSpec((C_OUT, 1), lambda n: (0, 0)),           # beta   (resident)
                pl.BlockSpec((C_OUT, K_PAD), lambda n: (0, 0)),       # weights(resident)
                pl.BlockSpec((B, C_IN, Sp), lambda n: (n, 0, 0)),     # input image block
            ],
            # Whole-batch output stays resident in VMEM across the (serial) grid
            # and is written back to HBM once, after the BN+ReLU epilogue.
            out_specs=pl.BlockSpec((N, C_OUT, S_pad), lambda n: (0, 0, 0)),
            scratch_shapes=[pltpu.VMEM((C_OUT, 1), f32),    # per-channel sum
                            pltpu.VMEM((C_OUT, 1), f32)],   # per-channel sum of squares
        ),
        # The image-block axis carries the stats accumulation -> "arbitrary".
        compiler_params=pltpu.CompilerParams(
            dimension_semantics=("arbitrary",)),
        cost_estimate=pl.CostEstimate(
            flops=2 * N * C_OUT * K_PAD * S_pad + 6 * N * C_OUT * S_pad,
            transcendentals=C_OUT,
            bytes_accessed=(xf.size * 4 + masks.size * 4 + w_mat.size * 2
                            + (gamma2.size + beta2.size) * 4
                            + N * C_OUT * S_pad * 4),
        ),
    )(masks, gamma2, beta2, w_mat, xf)

    # (N, C_OUT, S_pad) -> (N, C_OUT, H, W): slice off lane padding, free reshape.
    return out_flat[:, :, :S].reshape(N, C_OUT, H, W)


def _reference(x, conv_w, gamma, beta):
    """Pure-XLA f32 reference: conv + training-mode BN (biased var) + ReLU."""
    out = lax.conv_general_dilated(
        x, conv_w, window_strides=(1, 1), padding=((1, 1), (1, 1)),
        dimension_numbers=("NCHW", "OIHW", "NCHW"))
    mean = jnp.mean(out, axis=(0, 2, 3), keepdims=True)
    var = jnp.mean((out - mean) ** 2, axis=(0, 2, 3), keepdims=True)
    y = (out - mean) * lax.rsqrt(var + BN_EPS)
    y = y * gamma.reshape(1, -1, 1, 1) + beta.reshape(1, -1, 1, 1)
    return jnp.maximum(y, 0.0)


if __name__ == "__main__":
    key = jax.random.PRNGKey(0)
    kx, kw = jax.random.split(key)

    N, H, W = 2, 16, 16
    x = jax.random.normal(kx, (N, C_IN, H, W), dtype=jnp.float32)

    # Deterministic synthetic parameters (fresh BatchNorm2d: gamma=1, beta=0).
    fan_in = C_IN * KH * KW
    conv_w = jax.random.normal(kw, (C_OUT, C_IN, KH, KW), dtype=jnp.float32) * (fan_in ** -0.5)
    gamma = jnp.ones((C_OUT,), dtype=jnp.float32)
    beta = jnp.zeros((C_OUT,), dtype=jnp.float32)

    out = model1_forward(x, conv_w, gamma, beta)
    jax.block_until_ready(out)

    assert out.shape == (N, C_OUT, H, W), out.shape
    assert out.dtype == jnp.float32

    ref = _reference(x, conv_w, gamma, beta)
    err = jnp.abs(out - ref)
    max_err = float(jnp.max(err))
    mean_err = float(jnp.mean(err))
    # bf16 matmul inputs with f32 accumulation vs. an exact f32 reference:
    # expected envelope is a few 1e-3 RMS; keep a bf16-appropriate tolerance.
    assert max_err < 3e-2, f"max abs error vs f32 reference: {max_err}"
    assert mean_err < 5e-3, f"mean abs error vs f32 reference: {mean_err}"

    print("KERNEL_OK")
</pallas_src>

<mosaic_0001>
module attributes {stable_mosaic.version = 11 : i64} {
  func.func @_fused_conv_bn_relu_kernel(%arg0: i32, %arg1: memref<2x512xf32, #tpu.memory_space<vmem>>, %arg2: memref<16x1xf32, #tpu.memory_space<vmem>>, %arg3: memref<16x1xf32, #tpu.memory_space<vmem>>, %arg4: memref<16x32xbf16, #tpu.memory_space<vmem>>, %arg5: memref<2x3x290xf32, #tpu.memory_space<vmem>>, %arg6: memref<2x16x256xf32, #tpu.memory_space<vmem>>, %arg7: memref<16x1xf32, #tpu.memory_space<vmem>>, %arg8: memref<16x1xf32, #tpu.memory_space<vmem>>) attributes {dimension_semantics = [#tpu.dimension_semantics<arbitrary>], iteration_bounds = array<i64: 1>, scalar_prefetch = 0 : i64, scratch_operands = 2 : i64, tpu.core_type = #tpu.core_type<tc>, window_params = [{pipeline_mode = #tpu.pipeline_mode<synchronous>, transform_indices = @transform_0, window_bounds = array<i64: 2, 512>}, {pipeline_mode = #tpu.pipeline_mode<synchronous>, transform_indices = @transform_1, window_bounds = array<i64: 16, 1>}, {pipeline_mode = #tpu.pipeline_mode<synchronous>, transform_indices = @transform_2, window_bounds = array<i64: 16, 1>}, {pipeline_mode = #tpu.pipeline_mode<synchronous>, transform_indices = @transform_3, window_bounds = array<i64: 16, 32>}, {transform_indices = @transform_4, window_bounds = array<i64: 2, 3, 290>}, {pipeline_mode = #tpu.pipeline_mode<synchronous>, transform_indices = @transform_5, window_bounds = array<i64: 2, 16, 256>}]} {
    %c0_i32 = arith.constant 0 : i32
    %0 = arith.cmpi eq, %arg0, %c0_i32 : i32
    %1 = arith.extui %0 : i1 to i32
    %c0_i32_0 = arith.constant 0 : i32
    %2 = arith.cmpi ne, %1, %c0_i32_0 : i32
    scf.if %2 {
      %cst_71 = arith.constant 0.000000e+00 : f32
      %93 = vector.broadcast %cst_71 : f32 to vector<16x1xf32>
      %c0_72 = arith.constant 0 : index
      %c0_73 = arith.constant 0 : index
      %94 = vector.load %arg7[%c0_72, %c0_73] : memref<16x1xf32, #tpu.memory_space<vmem>>, vector<16x1xf32>
      tpu.vector_store %arg7[%c0_72, %c0_73], %93 {strides = array<i32>} : memref<16x1xf32, #tpu.memory_space<vmem>>, vector<16x1xf32>,
      %cst_74 = arith.constant 0.000000e+00 : f32
      %95 = vector.broadcast %cst_74 : f32 to vector<16x1xf32>
      %c0_75 = arith.constant 0 : index
      %c0_76 = arith.constant 0 : index
      %96 = vector.load %arg8[%c0_75, %c0_76] : memref<16x1xf32, #tpu.memory_space<vmem>>, vector<16x1xf32>
      tpu.vector_store %arg8[%c0_75, %c0_76], %95 {strides = array<i32>} : memref<16x1xf32, #tpu.memory_space<vmem>>, vector<16x1xf32>,
    } else {
    }
    %c0 = arith.constant 0 : index
    %c0_1 = arith.constant 0 : index
    %3 = vector.load %arg1[%c0, %c0_1] : memref<2x512xf32, #tpu.memory_space<vmem>>, vector<1x512xf32>
    %c1 = arith.constant 1 : index
    %c0_2 = arith.constant 0 : index
    %4 = vector.load %arg1[%c1, %c0_2] : memref<2x512xf32, #tpu.memory_space<vmem>>, vector<1x512xf32>
    %c0_3 = arith.constant 0 : index
    %c0_4 = arith.constant 0 : index
    %c0_5 = arith.constant 0 : index
    %5 = vector.load %arg5[%c0_3, %c0_4, %c0_5] : memref<2x3x290xf32, #tpu.memory_space<vmem>>, vector<1x3x256xf32>
    %6 = vector.shape_cast %5 : vector<1x3x256xf32> to vector<3x256xf32>
    %c1_6 = arith.constant 1 : index
    %c0_7 = arith.constant 0 : index
    %c0_8 = arith.constant 0 : index
    %7 = vector.load %arg5[%c1_6, %c0_7, %c0_8] : memref<2x3x290xf32, #tpu.memory_space<vmem>>, vector<1x3x256xf32>
    %8 = vector.shape_cast %7 : vector<1x3x256xf32> to vector<3x256xf32>
    %9 = tpu.concatenate %6, %8 in 1 : vector<3x256xf32>, vector<3x256xf32> -> vector<3x512xf32>
    %10 = vector.broadcast %3 : vector<1x512xf32> to vector<3x512xf32>
    %11 = arith.mulf %9, %10 : vector<3x512xf32>
    %c0_9 = arith.constant 0 : index
    %c0_10 = arith.constant 0 : index
    %c1_11 = arith.constant 1 : index
    %12 = vector.load %arg5[%c0_9, %c0_10, %c1_11] : memref<2x3x290xf32, #tpu.memory_space<vmem>>, vector<1x3x256xf32>
    %13 = vector.shape_cast %12 : vector<1x3x256xf32> to vector<3x256xf32>
    %c1_12 = arith.constant 1 : index
    %c0_13 = arith.constant 0 : index
    %c1_14 = arith.constant 1 : index
    %14 = vector.load %arg5[%c1_12, %c0_13, %c1_14] : memref<2x3x290xf32, #tpu.memory_space<vmem>>, vector<1x3x256xf32>
    %15 = vector.shape_cast %14 : vector<1x3x256xf32> to vector<3x256xf32>
    %16 = tpu.concatenate %13, %15 in 1 : vector<3x256xf32>, vector<3x256xf32> -> vector<3x512xf32>
    %c0_15 = arith.constant 0 : index
    %c0_16 = arith.constant 0 : index
    %c2 = arith.constant 2 : index
    %17 = vector.load %arg5[%c0_15, %c0_16, %c2] : memref<2x3x290xf32, #tpu.memory_space<vmem>>, vector<1x3x256xf32>
    %18 = vector.shape_cast %17 : vector<1x3x256xf32> to vector<3x256xf32>
    %c1_17 = arith.constant 1 : index
    %c0_18 = arith.constant 0 : index
    %c2_19 = arith.constant 2 : index
    %19 = vector.load %arg5[%c1_17, %c0_18, %c2_19] : memref<2x3x290xf32, #tpu.memory_space<vmem>>, vector<1x3x256xf32>
    %20 = vector.shape_cast %19 : vector<1x3x256xf32> to vector<3x256xf32>
    %21 = tpu.concatenate %18, %20 in 1 : vector<3x256xf32>, vector<3x256xf32> -> vector<3x512xf32>
    %22 = vector.broadcast %4 : vector<1x512xf32> to vector<3x512xf32>
    %23 = arith.mulf %21, %22 : vector<3x512xf32>
    %c0_20 = arith.constant 0 : index
    %c0_21 = arith.constant 0 : index
    %c16 = arith.constant 16 : index
    %24 = vector.load %arg5[%c0_20, %c0_21, %c16] : memref<2x3x290xf32, #tpu.memory_space<vmem>>, vector<1x3x256xf32>
    %25 = vector.shape_cast %24 : vector<1x3x256xf32> to vector<3x256xf32>
    %c1_22 = arith.constant 1 : index
    %c0_23 = arith.constant 0 : index
    %c16_24 = arith.constant 16 : index
    %26 = vector.load %arg5[%c1_22, %c0_23, %c16_24] : memref<2x3x290xf32, #tpu.memory_space<vmem>>, vector<1x3x256xf32>
    %27 = vector.shape_cast %26 : vector<1x3x256xf32> to vector<3x256xf32>
    %28 = tpu.concatenate %25, %27 in 1 : vector<3x256xf32>, vector<3x256xf32> -> vector<3x512xf32>
    %29 = vector.broadcast %3 : vector<1x512xf32> to vector<3x512xf32>
    %30 = arith.mulf %28, %29 : vector<3x512xf32>
    %c0_25 = arith.constant 0 : index
    %c0_26 = arith.constant 0 : index
    %c17 = arith.constant 17 : index
    %31 = vector.load %arg5[%c0_25, %c0_26, %c17] : memref<2x3x290xf32, #tpu.memory_space<vmem>>, vector<1x3x256xf32>
    %32 = vector.shape_cast %31 : vector<1x3x256xf32> to vector<3x256xf32>
    %c1_27 = arith.constant 1 : index
    %c0_28 = arith.constant 0 : index
    %c17_29 = arith.constant 17 : index
    %33 = vector.load %arg5[%c1_27, %c0_28, %c17_29] : memref<2x3x290xf32, #tpu.memory_space<vmem>>, vector<1x3x256xf32>
    %34 = vector.shape_cast %33 : vector<1x3x256xf32> to vector<3x256xf32>
    %35 = tpu.concatenate %32, %34 in 1 : vector<3x256xf32>, vector<3x256xf32> -> vector<3x512xf32>
    %c0_30 = arith.constant 0 : index
    %c0_31 = arith.constant 0 : index
    %c18 = arith.constant 18 : index
    %36 = vector.load %arg5[%c0_30, %c0_31, %c18] : memref<2x3x290xf32, #tpu.memory_space<vmem>>, vector<1x3x256xf32>
    %37 = vector.shape_cast %36 : vector<1x3x256xf32> to vector<3x256xf32>
    %c1_32 = arith.constant 1 : index
    %c0_33 = arith.constant 0 : index
    %c18_34 = arith.constant 18 : index
    %38 = vector.load %arg5[%c1_32, %c0_33, %c18_34] : memref<2x3x290xf32, #tpu.memory_space<vmem>>, vector<1x3x256xf32>
    %39 = vector.shape_cast %38 : vector<1x3x256xf32> to vector<3x256xf32>
    %40 = tpu.concatenate %37, %39 in 1 : vector<3x256xf32>, vector<3x256xf32> -> vector<3x512xf32>
    %41 = vector.broadcast %4 : vector<1x512xf32> to vector<3x512xf32>
    %42 = arith.mulf %40, %41 : vector<3x512xf32>
    %c0_35 = arith.constant 0 : index
    %c0_36 = arith.constant 0 : index
    %c32 = arith.constant 32 : index
    %43 = vector.load %arg5[%c0_35, %c0_36, %c32] : memref<2x3x290xf32, #tpu.memory_space<vmem>>, vector<1x3x256xf32>
    %44 = vector.shape_cast %43 : vector<1x3x256xf32> to vector<3x256xf32>
    %c1_37 = arith.constant 1 : index
    %c0_38 = arith.constant 0 : index
    %c32_39 = arith.constant 32 : index
    %45 = vector.load %arg5[%c1_37, %c0_38, %c32_39] : memref<2x3x290xf32, #tpu.memory_space<vmem>>, vector<1x3x256xf32>
    %46 = vector.shape_cast %45 : vector<1x3x256xf32> to vector<3x256xf32>
    %47 = tpu.concatenate %44, %46 in 1 : vector<3x256xf32>, vector<3x256xf32> -> vector<3x512xf32>
    %48 = vector.broadcast %3 : vector<1x512xf32> to vector<3x512xf32>
    %49 = arith.mulf %47, %48 : vector<3x512xf32>
    %c0_40 = arith.constant 0 : index
    %c0_41 = arith.constant 0 : index
    %c33 = arith.constant 33 : index
    %50 = vector.load %arg5[%c0_40, %c0_41, %c33] : memref<2x3x290xf32, #tpu.memory_space<vmem>>, vector<1x3x256xf32>
    %51 = vector.shape_cast %50 : vector<1x3x256xf32> to vector<3x256xf32>
    %c1_42 = arith.constant 1 : index
    %c0_43 = arith.constant 0 : index
    %c33_44 = arith.constant 33 : index
    %52 = vector.load %arg5[%c1_42, %c0_43, %c33_44] : memref<2x3x290xf32, #tpu.memory_space<vmem>>, vector<1x3x256xf32>
    %53 = vector.shape_cast %52 : vector<1x3x256xf32> to vector<3x256xf32>
    %54 = tpu.concatenate %51, %53 in 1 : vector<3x256xf32>, vector<3x256xf32> -> vector<3x512xf32>
    %c0_45 = arith.constant 0 : index
    %c0_46 = arith.constant 0 : index
    %c34 = arith.constant 34 : index
    %55 = vector.load %arg5[%c0_45, %c0_46, %c34] : memref<2x3x290xf32, #tpu.memory_space<vmem>>, vector<1x3x256xf32>
    %56 = vector.shape_cast %55 : vector<1x3x256xf32> to vector<3x256xf32>
    %c1_47 = arith.constant 1 : index
    %c0_48 = arith.constant 0 : index
    %c34_49 = arith.constant 34 : index
    %57 = vector.load %arg5[%c1_47, %c0_48, %c34_49] : memref<2x3x290xf32, #tpu.memory_space<vmem>>, vector<1x3x256xf32>
    %58 = vector.shape_cast %57 : vector<1x3x256xf32> to vector<3x256xf32>
    %59 = tpu.concatenate %56, %58 in 1 : vector<3x256xf32>, vector<3x256xf32> -> vector<3x512xf32>
    %60 = vector.broadcast %4 : vector<1x512xf32> to vector<3x512xf32>
    %61 = arith.mulf %59, %60 : vector<3x512xf32>
    %cst = arith.constant 0.000000e+00 : f32
    %62 = vector.broadcast %cst : f32 to vector<5x512xf32>
    %63 = tpu.concatenate %11, %16, %23, %30, %35, %42, %49, %54, %61, %62 in 0 : vector<3x512xf32>, vector<3x512xf32>, vector<3x512xf32>, vector<3x512xf32>, vector<3x512xf32>, vector<3x512xf32>, vector<3x512xf32>, vector<3x512xf32>, vector<3x512xf32>, vector<5x512xf32> -> vector<32x512xf32>
    %64 = arith.truncf %63 : vector<32x512xf32> to vector<32x512xbf16>
    %c0_50 = arith.constant 0 : index
    %c0_51 = arith.constant 0 : index
    %65 = vector.load %arg4[%c0_50, %c0_51] : memref<16x32xbf16, #tpu.memory_space<vmem>>, vector<16x32xbf16>
    %cst_52 = arith.constant dense<0.000000e+00> : vector<16x512xf32>
    %66 = tpu.matmul %65, %64, %cst_52 {dimension_numbers = #tpu.dot_dimension_numbers<[1], [0], [0], [1], [0, 0, 1, 1], [], []>} : vector<16x32xbf16>, vector<32x512xbf16>, vector<16x512xf32> -> vector<16x512xf32>
    %c0_53 = arith.constant 0 : index
    %c0_54 = arith.constant 0 : index
    %67 = vector.load %arg7[%c0_53, %c0_54] : memref<16x1xf32, #tpu.memory_space<vmem>>, vector<16x1xf32>
    %cst_55 = arith.constant dense<0.000000e+00> : vector<16xf32>
    %68 = vector.multi_reduction <add>, %66, %cst_55 [1] : vector<16x512xf32> to vector<16xf32>
    %69 = vector.shape_cast %68 : vector<16xf32> to vector<16x1xf32>
    %70 = arith.addf %67, %69 : vector<16x1xf32>
    %c0_56 = arith.constant 0 : index
    %c0_57 = arith.constant 0 : index
    %71 = vector.load %arg7[%c0_56, %c0_57] : memref<16x1xf32, #tpu.memory_space<vmem>>, vector<16x1xf32>
    tpu.vector_store %arg7[%c0_56, %c0_57], %70 {strides = array<i32>} : memref<16x1xf32, #tpu.memory_space<vmem>>, vector<16x1xf32>,
    %c0_58 = arith.constant 0 : index
    %c0_59 = arith.constant 0 : index
    %72 = vector.load %arg8[%c0_58, %c0_59] : memref<16x1xf32, #tpu.memory_space<vmem>>, vector<16x1xf32>
    %73 = arith.mulf %66, %66 : vector<16x512xf32>
    %cst_60 = arith.constant dense<0.000000e+00> : vector<16xf32>
    %74 = vector.multi_reduction <add>, %73, %cst_60 [1] : vector<16x512xf32> to vector<16xf32>
    %75 = vector.shape_cast %74 : vector<16xf32> to vector<16x1xf32>
    %76 = arith.addf %72, %75 : vector<16x1xf32>
    %c0_61 = arith.constant 0 : index
    %c0_62 = arith.constant 0 : index
    %77 = vector.load %arg8[%c0_61, %c0_62] : memref<16x1xf32, #tpu.memory_space<vmem>>, vector<16x1xf32>
    tpu.vector_store %arg8[%c0_61, %c0_62], %76 {strides = array<i32>} : memref<16x1xf32, #tpu.memory_space<vmem>>, vector<16x1xf32>,
    %c2_i32 = arith.constant 2 : i32
    %78 = arith.muli %arg0, %c2_i32 : i32
    %c0_i32_63 = arith.constant 0 : i32
    %79 = arith.addi %78, %c0_i32_63 : i32
    %80 = vector.extract_strided_slice %66 {offsets = [0, 0], sizes = [16, 256], strides = [1, 1]} : vector<16x512xf32> to vector<16x256xf32>
    %81 = vector.shape_cast %80 : vector<16x256xf32> to vector<1x16x256xf32>
    %82 = arith.index_cast %79 : i32 to index
    %c0_64 = arith.constant 0 : index
    %c0_65 = arith.constant 0 : index
    %83 = vector.load %arg6[%82, %c0_64, %c0_65] : memref<2x16x256xf32, #tpu.memory_space<vmem>>, vector<1x16x256xf32>
    tpu.vector_store %arg6[%82, %c0_64, %c0_65], %81 {strides = array<i32>} : memref<2x16x256xf32, #tpu.memory_space<vmem>>, vector<1x16x256xf32>,
    %c2_i32_66 = arith.constant 2 : i32
    %84 = arith.muli %arg0, %c2_i32_66 : i32
    %c1_i32 = arith.constant 1 : i32
    %85 = arith.addi %84, %c1_i32 : i32
    %86 = vector.extract_strided_slice %66 {offsets = [0, 256], sizes = [16, 256], strides = [1, 1]} : vector<16x512xf32> to vector<16x256xf32>
    %87 = vector.shape_cast %86 : vector<16x256xf32> to vector<1x16x256xf32>
    %88 = arith.index_cast %85 : i32 to index
    %c0_67 = arith.constant 0 : index
    %c0_68 = arith.constant 0 : index
    %89 = vector.load %arg6[%88, %c0_67, %c0_68] : memref<2x16x256xf32, #tpu.memory_space<vmem>>, vector<1x16x256xf32>
    tpu.vector_store %arg6[%88, %c0_67, %c0_68], %87 {strides = array<i32>} : memref<2x16x256xf32, #tpu.memory_space<vmem>>, vector<1x16x256xf32>,
    %c0_i32_69 = arith.constant 0 : i32
    %90 = arith.cmpi eq, %arg0, %c0_i32_69 : i32
    %91 = arith.extui %90 : i1 to i32
    %c0_i32_70 = arith.constant 0 : i32
    %92 = arith.cmpi ne, %91, %c0_i32_70 : i32
    scf.if %92 {
      %c0_71 = arith.constant 0 : index
      %c0_72 = arith.constant 0 : index
      %93 = vector.load %arg7[%c0_71, %c0_72] : memref<16x1xf32, #tpu.memory_space<vmem>>, vector<16x1xf32>
      %cst_73 = arith.constant 0.001953125 : f32
      %94 = vector.broadcast %cst_73 : f32 to vector<16x1xf32>
      %95 = arith.mulf %93, %94 : vector<16x1xf32>
      %c0_74 = arith.constant 0 : index
      %c0_75 = arith.constant 0 : index
      %96 = vector.load %arg8[%c0_74, %c0_75] : memref<16x1xf32, #tpu.memory_space<vmem>>, vector<16x1xf32>
      %cst_76 = arith.constant 0.001953125 : f32
      %97 = vector.broadcast %cst_76 : f32 to vector<16x1xf32>
      %98 = arith.mulf %96, %97 : vector<16x1xf32>
      %99 = arith.mulf %95, %95 : vector<16x1xf32>
      %100 = arith.subf %98, %99 : vector<16x1xf32>
      %cst_77 = arith.constant 9.99999974E-6 : f32
      %101 = vector.broadcast %cst_77 : f32 to vector<16x1xf32>
      %102 = arith.addf %100, %101 : vector<16x1xf32>
      %103 = math.rsqrt %102 : vector<16x1xf32>
      %c0_78 = arith.constant 0 : index
      %c0_79 = arith.constant 0 : index
      %104 = vector.load %arg2[%c0_78, %c0_79] : memref<16x1xf32, #tpu.memory_space<vmem>>, vector<16x1xf32>
      %105 = arith.mulf %104, %103 : vector<16x1xf32>
      %c0_80 = arith.constant 0 : index
      %c0_81 = arith.constant 0 : index
      %106 = vector.load %arg3[%c0_80, %c0_81] : memref<16x1xf32, #tpu.memory_space<vmem>>, vector<16x1xf32>
      %107 = arith.mulf %95, %105 : vector<16x1xf32>
      %108 = arith.subf %106, %107 : vector<16x1xf32>
      %c0_82 = arith.constant 0 : index
      %c0_83 = arith.constant 0 : index
      %c0_84 = arith.constant 0 : index
      %109 = vector.load %arg6[%c0_82, %c0_83, %c0_84] : memref<2x16x256xf32, #tpu.memory_space<vmem>>, vector<2x16x256xf32>
      %110 = vector.shape_cast %105 : vector<16x1xf32> to vector<1x16x1xf32>
      %111 = vector.broadcast %110 : vector<1x16x1xf32> to vector<2x16x256xf32>
      %112 = arith.mulf %109, %111 : vector<2x16x256xf32>
      %113 = vector.shape_cast %108 : vector<16x1xf32> to vector<1x16x1xf32>
      %114 = vector.broadcast %113 : vector<1x16x1xf32> to vector<2x16x256xf32>
      %115 = arith.addf %112, %114 : vector<2x16x256xf32>
      %cst_85 = arith.constant 0.000000e+00 : f32
      %116 = vector.broadcast %cst_85 : f32 to vector<2x16x256xf32>
      %117 = arith.maximumf %115, %116 : vector<2x16x256xf32>
      %c0_86 = arith.constant 0 : index
      %c0_87 = arith.constant 0 : index
      %c0_88 = arith.constant 0 : index
      %118 = vector.load %arg6[%c0_86, %c0_87, %c0_88] : memref<2x16x256xf32, #tpu.memory_space<vmem>>, vector<2x16x256xf32>
      tpu.vector_store %arg6[%c0_86, %c0_87, %c0_88], %117 {strides = array<i32>} : memref<2x16x256xf32, #tpu.memory_space<vmem>>, vector<2x16x256xf32>,
    } else {
    }
    return
  }
  func.func @transform_0(%arg0: i32) -> (i32, i32) {
    %c0_i32 = arith.constant 0 : i32
    %c0_i32_0 = arith.constant 0 : i32
    %c0_i32_1 = arith.constant 0 : i32
    return %c0_i32, %c0_i32_0 : i32, i32
  }
  func.func @transform_1(%arg0: i32) -> (i32, i32) {
    %c0_i32 = arith.constant 0 : i32
    %c0_i32_0 = arith.constant 0 : i32
    %c0_i32_1 = arith.constant 0 : i32
    return %c0_i32, %c0_i32_0 : i32, i32
  }
  func.func @transform_2(%arg0: i32) -> (i32, i32) {
    %c0_i32 = arith.constant 0 : i32
    %c0_i32_0 = arith.constant 0 : i32
    %c0_i32_1 = arith.constant 0 : i32
    return %c0_i32, %c0_i32_0 : i32, i32
  }
  func.func @transform_3(%arg0: i32) -> (i32, i32) {
    %c0_i32 = arith.constant 0 : i32
    %c0_i32_0 = arith.constant 0 : i32
    %c0_i32_1 = arith.constant 0 : i32
    return %c0_i32, %c0_i32_0 : i32, i32
  }
  func.func @transform_4(%arg0: i32) -> (i32, i32, i32) {
    %c0_i32 = arith.constant 0 : i32
    %c0_i32_0 = arith.constant 0 : i32
    %c0_i32_1 = arith.constant 0 : i32
    return %arg0, %c0_i32, %c0_i32_0 : i32, i32, i32
  }
  func.func @transform_5(%arg0: i32) -> (i32, i32, i32) {
    %c0_i32 = arith.constant 0 : i32
    %c0_i32_0 = arith.constant 0 : i32
    %c0_i32_1 = arith.constant 0 : i32
    %c0_i32_2 = arith.constant 0 : i32
    return %c0_i32, %c0_i32_0, %c0_i32_1 : i32, i32, i32
  }
}

</mosaic_0001>

<bundles_post_ra>
// kernel: model1_forward.1
= control target key start
LH: loop header
LB: loop body
LE: loop exit
PB: predicated region body
PF: predicated region fallthrough
CT: control target
= control target key end

     0   :  { %s722_s22 = smov 96   ;;  %s723_s23 = smov 110   ;;  %v730_v9 = vmov 0   ;;  %v43_v18 = vlaneseq  ;;  %vm207_vm0 = vcmask 785408   ;;  %vm182_vm1 = vcmask 900096   ;;  %s1138_s4 = inlined_call_operand.vmem [shape: f32[2,3,290], index: 4, kind: input, shape index: {}]   ;;  %s1139_s3 = inlined_call_operand.vmem [shape: bf16[16,32], index: 3, kind: input, shape index: {}]   ;;  %s1140_s0 = inlined_call_operand.vmem [shape: f32[2,512], index: 0, kind: input, shape index: {}]   ;;  %s1141_s1 = inlined_call_operand.vmem [shape: f32[16,1], index: 1, kind: input, shape index: {}]   ;;  %s1142_s2 = inlined_call_operand.vmem [shape: f32[16,1], index: 2, kind: input, shape index: {}]   ;;  %s1143_s5 = inlined_call_operand.vmem [shape: f32[2,16,256], index: 5, kind: output, shape index: {}]  }
   0x1   :  { %v67_v0 = vld [vmem:[%s1138_s4 + $0x8] sm:$0x7]  ;;  %v769_v1 = vld [vmem:[%s1138_s4] sm:$0x77]  ;;  %s724_s24 = smov 126   ;;  %s725_s25 = smov 112   ;;  %430 = vmatprep.mubr.bf16.mxu0 %v730_v9  ;;  %473 = vmatprep.mubr.bf16.mxu1 %v730_v9 }
   0x2   :  { %205 = vrot.lane.b32.xlu1 %v67_v0, %s722_s22  ;;  %180 = vrot.lane.b32.xlu0 %v67_v0, %s723_s23  ;;  %v775_v2 = vcombine.high %v769_v1, %v769_v1  ;;  %v795_v4 = vld [vmem:[%s1138_s4 + $0xc] sm:$0x77]  ;;  %s726_s28 = smov 95   ;;  %v637_v6 = vld [vmem:[%s1138_s4 + $0x14] sm:$0x7]  ;;  %s727_s6 = smov 94  }
   0x3   :  { %v801_v5 = vcombine.high %v795_v4, %v795_v4  ;;  %s728_s4 = smov 127   ;;  %s729_s7 = smov 111   ;;  %v698_v8 = vpack.i.bf16 %v795_v4, %v637_v6  ;;  %714 = vset.pattern.permute.xlu1 %v730_v9  ;;  %713 = vset.pattern.permute.xlu0 %v730_v9  ;;  %v841_v21 = vshrl.u32 %v43_v18, 7  ;;  %v849_v25 = vld [vmem:[%s1140_s0] ss:$2 sm:$0xf] }
   0x4   :  { %v668_v3 = vpack.i.bf16 %v67_v0, %v775_v2  ;;  %v854_v26 = vld [vmem:[%s1140_s0 + $0x1] ss:$2 sm:$0xf]  ;;  %vm232_vm2 = vcmask 777216   ;;  %vm249_vm3 = vcmask 769024   ;;  %vm365_vm4 = vcmask 1041408  }
   0x5   :  { %v673_v7 = vpack.i.bf16 %v801_v5, %v769_v1  ;;  %v49_v24 = vsub.s32 1, %v841_v21  ;;  %v45_v37 = vsub.s32 0, %v841_v21  ;;  %vm340_vm5 = vcmask 1042432  }
   0x6   :  { %203 = vrot.lane.b32.xlu1 %v775_v2, %s722_s22  ;;  %178 = vrot.lane.b32.xlu0 %v775_v2, %s723_s23  ;;  %vm370_vm6 = vcmask 1044480   ;;  %vm140_vm7 = vcmask 916480   ;;  %vm731_vm8 = vmmov 1   ;;  %vm94_vm10 = vcmask 1031168  }
   0x7   :  { %v861_v29 = vrot.slane %v849_v25, %v49_v24  ;;  %v117_v30 = vrot.slane %v854_v26, %v49_v24  ;;  %v880_v43 = vrot.slane %v849_v25, %v45_v37  ;;  %v884_v46 = vrot.slane %v854_v26, %v45_v37  ;;  %vm899_vm9 = vmpackc.low %vm340_vm5, %vm731_vm8 }
   0x8   :  { %vm76_vm11 = vcmask 1039360   ;;  %vm165_vm12 = vcmask 908288   ;;  %vm350_vm13 = vcmask 1040384   ;;  %vm355_vm14 = vcmask 1043456  }
   0x9   :  { %vm345_vm15 = vcmask 1045504   ;;  %vm360_vm8 = vcmask 1046528  }
   0xa   :  { %201 = vrot.lane.b32.xlu1 %v769_v1, %s722_s22  ;;  %176 = vrot.lane.b32.xlu0 %v769_v1, %s723_s23 }
   0xe   :  { %92 = vrot.lane.b32.xlu1 %v67_v0, %s724_s24  ;;  %90 = vrot.lane.b32.xlu0 %v775_v2, %s724_s24 }
  0x12   :  { %138 = vrot.lane.b32.xlu1 %v67_v0, %s725_s25  ;;  %136 = vrot.lane.b32.xlu0 %v775_v2, %s725_s25 }
  0x16   :  { %88 = vrot.lane.b32.xlu1 %v769_v1, %s724_s24  ;;  %669 = vrot.lane.b32.xlu0 %v668_v3, %s726_s28 }
  0x1a   :  { %189 = vrot.lane.b32.xlu1 %v801_v5, %s723_s23  ;;  %134 = vrot.lane.b32.xlu0 %v769_v1, %s725_s25 }
  0x1e   :  { %214 = vrot.lane.b32.xlu1 %v801_v5, %s722_s22  ;;  %191 = vrot.lane.b32.xlu0 %v637_v6, %s723_s23 }
  0x22   :  { %674 = vrot.lane.b32.xlu1 %v673_v7, %s726_s28  ;;  %216 = vrot.lane.b32.xlu0 %v637_v6, %s722_s22 }
  0x26   :  { %247 = vrot.lane.b32.xlu1 %v67_v0, %s727_s6  ;;  %245 = vrot.lane.b32.xlu0 %v775_v2, %s727_s6 }
  0x2a   :  { %212 = vrot.lane.b32.xlu1 %v795_v4, %s722_s22  ;;  %187 = vrot.lane.b32.xlu0 %v795_v4, %s723_s23 }
  0x2e   :  { %679 = vrot.lane.b32.xlu1 %v668_v3, %s728_s4  ;;  %243 = vrot.lane.b32.xlu0 %v769_v1, %s727_s6 }
  0x32   :  { %689 = vrot.lane.b32.xlu1 %v673_v7, %s728_s4  ;;  %684 = vrot.lane.b32.xlu0 %v668_v3, %s729_s7 }
  0x36   :  { %103 = vrot.lane.b32.xlu1 %v637_v6, %s724_s24  ;;  %101 = vrot.lane.b32.xlu0 %v801_v5, %s724_s24 }
  0x3a   :  { %149 = vrot.lane.b32.xlu1 %v637_v6, %s725_s25  ;;  %147 = vrot.lane.b32.xlu0 %v801_v5, %s725_s25 }
  0x3e   :  { %699 = vrot.lane.b32.xlu1 %v698_v8, %s726_s28  ;;  %694 = vrot.lane.b32.xlu0 %v673_v7, %s729_s7 }
  0x42   :  { %145 = vrot.lane.b32.xlu1 %v795_v4, %s725_s25  ;;  %99 = vrot.lane.b32.xlu0 %v795_v4, %s724_s24 }
  0x46   :  { %258 = vrot.lane.b32.xlu1 %v637_v6, %s727_s6  ;;  %256 = vrot.lane.b32.xlu0 %v801_v5, %s727_s6 }
  0x4a   :  { %704 = vrot.lane.b32.xlu1 %v698_v8, %s728_s4  ;;  %254 = vrot.lane.b32.xlu0 %v795_v4, %s727_s6 }
  0x4e   :  { %709 = vrot.lane.b32.xlu0 %v698_v8, %s729_s7 }
  0x74   :  { %v206_v10 = vpop.permute.xlu1 %205  ;;  %v181_v11 = vpop.permute.xlu0 %180 }
  0x78   :  { %v204_v12 = vpop.permute.xlu1 %203  ;;  %v179_v13 = vpop.permute.xlu0 %178 }
  0x79   :  { %v209_v31 = vsel %vm207_vm0, %v204_v12, %v206_v10  ;;  %v184_v32 = vsel %vm182_vm1, %v179_v13, %v181_v11 }
  0x7a   :  { %v223_v38 = vmul.f32 %v209_v31, %v861_v29  ;;  %v872_v39 = vmul.f32 %v184_v32, %v117_v30 }
  0x7c   :  { %v202_v14 = vpop.permute.xlu1 %201  ;;  %v177_v15 = vpop.permute.xlu0 %176  ;;  %v325_v44 = vrot.slane %v223_v38, 6  ;;  %v313_v45 = vrot.slane %v872_v39, 1  ;;  %v53_v39 = vsub.s32 2, %v841_v21 }
  0x7d   :  { %v208_v47 = vsel %vm207_vm0, %v202_v14, %v204_v12  ;;  %v183_v48 = vsel %vm182_vm1, %v177_v15, %v179_v13 }
  0x7e   :  { %v222_v54 = vmul.f32 %v208_v47, %v880_v43  ;;  %v892_v55 = vmul.f32 %v183_v48, %v884_v46  ;;  %v367_v57 = vsel %vm365_vm4, %v313_v45, %v325_v44 }
  0x80   :  { %v835_v16 = vpop.permute.xlu1 %92  ;;  %v837_v17 = vpop.permute.xlu0 %90  ;;  %v324_v0 = vrot.slane %v222_v54, 6  ;;  %v312_v3 = vrot.slane %v892_v55, 1  ;;  %v57_v54 = vsub.s32 3, %v841_v21  ;;  %v717_v55 = vld [vmem:[%s1139_s3] sm:$0xff]  }
  0x81   :  { %v96_v8 = vsel %vm94_vm10, %v837_v17, %v835_v16 }
  0x82   :  { %v366_v18 = vsel %vm365_vm4, %v312_v3, %v324_v0 }
  0x84   :  { %v139_v19 = vpop.permute.xlu1 %138  ;;  %v839_v20 = vpop.permute.xlu0 %136 }
  0x85   :  { %v142_v6 = vsel %vm140_vm7, %v839_v20, %v139_v19  ;;  %v131_v19 = vmul.f32 %v117_v30, %v96_v8 }
  0x86   :  { %v156_v11 = vmul.f32 %v142_v6, %v861_v29 }
  0x88   :  { %v843_v22 = vpop.permute.xlu1 %88  ;;  %v670_v23 = vpop.permute.xlu0 %669  ;;  %v293_v37 = vrot.slane %v156_v11, 7 }
  0x89   :  { %v672_v33 = vunpack.i.h.bf16 %v670_v23  ;;  %v671_v34 = vunpack.i.l.bf16 %v670_v23 }
  0x8b   :  { %v234_v40 = vsel %vm232_vm2, %v671_v34, %v672_v33 }
  0x8c   :  { %v856_v27 = vpop.permute.xlu1 %189  ;;  %v858_v28 = vpop.permute.xlu0 %134  ;;  %v333_v49 = vrot.slane %v234_v40, 3 }
  0x8e   :  { %v372_v58 = vsel %vm370_vm6, %v367_v57, %v333_v49 }
  0x90   :  { %v866_v35 = vpop.permute.xlu1 %214  ;;  %v868_v36 = vpop.permute.xlu0 %191 }
  0x91   :  { %v194_v6 = vsel %vm182_vm1, %v856_v27, %v868_v36  ;;  %v121_v36 = vrot.slane %v854_v26, %v53_v39 }
  0x94   :  { %v875_v41 = vpop.permute.xlu1 %674  ;;  %v877_v42 = vpop.permute.xlu0 %216 }
  0x95   :  { %v676_v50 = vunpack.i.l.bf16 %v875_v41 }
  0x97   :  { %v233_v60 = vsel %vm232_vm2, %v676_v50, %v671_v34  ;;  %v64_v34 = vmul.f32 %v861_v29, %v775_v2 }
  0x98   :  { %v248_v51 = vpop.permute.xlu1 %247  ;;  %v246_v52 = vpop.permute.xlu0 %245  ;;  %v332_v7 = vrot.slane %v233_v60, 3 }
  0x99   :  { %v251_v53 = vsel %vm249_vm3, %v246_v52, %v248_v51  ;;  %v141_v51 = vsel %vm140_vm7, %v858_v28, %v839_v20  ;;  %v952_v20 = vrot.slane %v849_v25, %v57_v54 }
  0x9a   :  { %v265_v56 = vmul.f32 %v251_v53, %v117_v30  ;;  %v371_v16 = vsel %vm370_vm6, %v366_v18, %v332_v7  ;;  %v281_v30 = vrot.slane %v131_v19, 2  ;;  %v95_v53 = vsel %vm94_vm10, %v843_v22, %v837_v17 }
  0x9b   :  { %v155_v0 = vmul.f32 %v141_v51, %v880_v43  ;;  %v130_v17 = vmul.f32 %v884_v46, %v95_v53  ;;  %v219_v22 = vsel %vm207_vm0, %v866_v35, %v877_v42 }
  0x9c   :  { %v904_v61 = vpop.permute.xlu1 %212  ;;  %v906_v62 = vpop.permute.xlu0 %187  ;;  %v640_v63 = vpack.c.bf16 %v265_v56, %v372_v58  ;;  %v352_v2 = vsel %vm350_vm13, %v281_v30, %v293_v37  ;;  %v225_v42 = vmul.f32 %v219_v22, %v952_v20  ;;  %v66_v22 = vmul.f32 %v952_v20, %v801_v5 }
  0x9e   :  { %641 = vmatprep.subr.msk.bf16.mxu0 %vm899_vm9, %v640_v63 }
  0xa0   :  { %v680_v9 = vpop.permute.xlu1 %679  ;;  %v244_v10 = vpop.permute.xlu0 %243 }
  0xa1   :  { %v682_v12 = vunpack.i.h.bf16 %v680_v9  ;;  %v681_v13 = vunpack.i.l.bf16 %v680_v9  ;;  %v250_v14 = vsel %vm249_vm3, %v244_v10, %v246_v52  ;;  %v292_v10 = vrot.slane %v155_v0, 7 }
  0xa2   :  { %v264_v15 = vmul.f32 %v250_v14, %v884_v46  ;;  %v63_v46 = vmul.f32 %v880_v43, %v769_v1  ;;  %v54_v14 = vrot.slane %v849_v25, %v53_v39  ;;  %v218_v1 = vsel %vm207_vm0, %v904_v61, %v866_v35 }
  0xa3   :  { %v78_v23 = vsel %vm76_vm11, %v681_v13, %v682_v12  ;;  %v280_v12 = vrot.slane %v130_v17, 2  ;;  %v193_v43 = vsel %vm182_vm1, %v906_v62, %v856_v27  ;;  %vm394_vm0 = vcmask 261120  }
  0xa4   :  { %v269_v24 = vrot.slane %v78_v23, 5  ;;  %v924_v31 = vpop.permute.xlu1 %689  ;;  %v685_v32 = vpop.permute.xlu0 %684  ;;  %v643_v33 = vpack.c.bf16 %v264_v15, %v371_v16  ;;  %vm25_vm1 = vcmask 7168  }
  0xa5   :  { %v687_v38 = vunpack.i.h.bf16 %v685_v32  ;;  %v686_v40 = vunpack.i.l.bf16 %v685_v32  ;;  %v691_v29 = vunpack.i.l.bf16 %v924_v31  ;;  %v327_v32 = vrot.slane %v225_v42, 6 }
  0xa6   :  { %644 = vmatpush1.bf16.msk.msra.mxu0 %vm899_vm9, %v643_v33  ;;  %v342_v50 = vsel %vm340_vm5, %v64_v34, %v269_v24  ;;  %v351_v24 = vsel %vm350_vm13, %v280_v12, %v292_v10  ;;  %v224_v33 = vmul.f32 %v218_v1, %v54_v14  ;;  %v988_v34 = vmul.f32 %v193_v43, %v121_v36 }
  0xa7   :  { %v167_v44 = vsel %vm165_vm12, %v686_v40, %v687_v38  ;;  %v347_v56 = vsel %vm345_vm15, %v342_v50, %v281_v30  ;;  %v77_v28 = vsel %vm76_vm11, %v691_v29, %v681_v13  ;;  %v677_v13 = vunpack.i.h.bf16 %v875_v41 }
  0xa8   :  { %v301_v47 = vrot.slane %v167_v44, 4  ;;  %v931_v48 = vpop.permute.xlu1 %103  ;;  %v933_v49 = vpop.permute.xlu0 %101  ;;  %v268_v7 = vrot.slane %v77_v28, 5  ;;  %v314_v51 = vrot.slane %v988_v34, 1 }
  0xaa   :  { %v357_v52 = vsel %vm355_vm14, %v352_v2, %v301_v47 }
  0xab   :  { %v362_v57 = vsel %vm360_vm8, %v357_v52, %v313_v45  ;;  %v961_v45 = vrot.slane %v854_v26, %v57_v54  ;;  %v341_v26 = vsel %vm340_vm5, %v63_v46, %v268_v7  ;;  %v106_v54 = vsel %vm94_vm10, %v933_v49, %v931_v48 }
  0xac   :  { %v150_v58 = vpop.permute.xlu1 %149  ;;  %v148_v60 = vpop.permute.xlu0 %147  ;;  %v380_v63 = vpack.c.bf16 %v362_v57, %v347_v56  ;;  %v346_v62 = vsel %vm345_vm15, %v341_v26, %v280_v12  ;;  %v65_v46 = vmul.f32 %v795_v4, %v54_v14 }
  0xad   :  { %v976_v15 = vmul.f32 %v194_v6, %v961_v45  ;;  %v152_v38 = vsel %vm140_vm7, %v148_v60, %v150_v58  ;;  %v133_v48 = vmul.f32 %v961_v45, %v106_v54 }
  0xae   :  { %412 = vmatprep.subr.bf16.mxu0 %v380_v63  ;;  %v158_v56 = vmul.f32 %v152_v38, %v952_v20 }
  0xaf   :  { %v315_v27 = vrot.slane %v976_v15, 1  ;;  %v283_v4 = vrot.slane %v133_v48, 2 }
  0xb0   :  { %v700_v8 = vpop.permute.xlu1 %699  ;;  %v966_v9 = vpop.permute.xlu0 %694  ;;  %v295_v10 = vrot.slane %v158_v56, 7 }
  0xb1   :  { %v701_v11 = vunpack.i.l.bf16 %v700_v8  ;;  %v696_v21 = vunpack.i.l.bf16 %v966_v9  ;;  %v702_v19 = vunpack.i.h.bf16 %v700_v8  ;;  %v369_v29 = vsel %vm365_vm4, %v315_v27, %v327_v32 }
  0xb3   :  { %v166_v18 = vsel %vm165_vm12, %v696_v21, %v686_v40  ;;  %v242_v41 = vsel %vm232_vm2, %v677_v13, %v701_v11  ;;  %v241_v40 = vsel %vm232_vm2, %v702_v19, %v677_v13  ;;  %v697_v11 = vunpack.i.h.bf16 %v966_v9 }
  0xb4   :  { %v300_v23 = vrot.slane %v166_v18, 4  ;;  %v146_v25 = vpop.permute.xlu1 %145  ;;  %v100_v16 = vpop.permute.xlu0 %99  ;;  %v335_v61 = vrot.slane %v242_v41, 3  ;;  %v334_v57 = vrot.slane %v241_v40, 3 }
  0xb5   :  { %v151_v50 = vsel %vm140_vm7, %v146_v25, %v148_v60  ;;  %v105_v52 = vsel %vm94_vm10, %v100_v16, %v933_v49  ;;  %v692_v60 = vunpack.i.h.bf16 %v924_v31  ;;  %v354_v16 = vsel %vm350_vm13, %v283_v4, %v295_v10 }
  0xb6   :  { %v356_v35 = vsel %vm355_vm14, %v351_v24, %v300_v23  ;;  %v374_v58 = vsel %vm370_vm6, %v369_v29, %v335_v61  ;;  %v157_v63 = vmul.f32 %v151_v50, %v54_v14  ;;  %v132_v39 = vmul.f32 %v121_v36, %v105_v52 }
  0xb7   :  { %v361_v37 = vsel %vm360_vm8, %v356_v35, %v312_v3  ;;  %v326_v3 = vrot.slane %v224_v33, 6 }
  0xb8   :  { %v259_v30 = vpop.permute.xlu1 %258  ;;  %v257_v44 = vpop.permute.xlu0 %256  ;;  %v379_v47 = vpack.c.bf16 %v361_v37, %v346_v62  ;;  %v282_v1 = vrot.slane %v132_v39, 2  ;;  %v732_v37 = vmov 0.0  }
  0xb9   :  { %v261_v2 = vsel %vm249_vm3, %v257_v44, %v259_v30  ;;  %v368_v31 = vsel %vm365_vm4, %v314_v51, %v326_v3  ;;  %26 = vst.msk [vmem:[#allocation2] sm:$0xff] %vm25_vm1, %v732_v37  ;;  %27 = vst.msk [vmem:[#allocation2 + $0x8] sm:$0xff] %vm25_vm1, %v732_v37 }
  0xba   :  { %v267_v53 = vmul.f32 %v261_v2, %v961_v45  ;;  %413 = vmatpush1.bf16.msra.mxu0 %v379_v47  ;;  %v373_v42 = vsel %vm370_vm6, %v368_v31, %v334_v57  ;;  %28 = vst.msk [vmem:[#allocation3] sm:$0xff] %vm25_vm1, %v732_v37  ;;  %29 = vst.msk [vmem:[#allocation3 + $0x8] sm:$0xff] %vm25_vm1, %v732_v37 }
  0xbc   :  { %v705_v0 = vpop.permute.xlu1 %704  ;;  %v255_v28 = vpop.permute.xlu0 %254  ;;  %v647_v17 = vpack.c.bf16 %v267_v53, %v374_v58 }
  0xbd   :  { %v707_v6 = vunpack.i.h.bf16 %v705_v0  ;;  %v706_v7 = vunpack.i.l.bf16 %v705_v0  ;;  %v260_v8 = vsel %vm249_vm3, %v255_v28, %v257_v44  ;;  %645 = vmatmul.mubr.msk.bf16.vlgmr.msra.gmra.mxu0 %vm394_vm0, %v717_v55 }
  0xbe   :  { %v266_v49 = vmul.f32 %v260_v8, %v121_v36  ;;  %648 = vmatprep.subr.msk.bf16.mxu1 %vm899_vm9, %v647_v17  ;;  %v294_v36 = vrot.slane %v157_v63, 7 }
  0xbf   :  { %v86_v5 = vsel %vm76_vm11, %v707_v6, %v692_v60  ;;  %v87_v20 = vsel %vm76_vm11, %v692_v60, %v706_v7 }
  0xc0   :  { %v270_v21 = vrot.slane %v86_v5, 5  ;;  %v271_v12 = vrot.slane %v87_v20, 5  ;;  %v710_v45 = vpop.permute.xlu0 %709  ;;  %v650_v13 = vpack.c.bf16 %v266_v49, %v373_v42  ;;  %v353_v26 = vsel %vm350_vm13, %v282_v1, %v294_v36  ;;  %v484_v8 = vld [vmem:[#allocation2] sm:$0xff]  ;;  %v485_v31 = vld [vmem:[#allocation2 + $0x8] sm:$0xff] }
  0xc1   :  { %v712_v43 = vunpack.i.h.bf16 %v710_v45  ;;  %v711_v18 = vunpack.i.l.bf16 %v710_v45  ;;  %v502_v10 = vld [vmem:[#allocation3 + $0x8] sm:$0xff]  ;;  %v501_v42 = vld [vmem:[#allocation3] sm:$0xff] }
  0xc2   :  { %651 = vmatpush1.bf16.msk.msra.mxu1 %vm899_vm9, %v650_v13  ;;  %v344_v9 = vsel %vm340_vm5, %v66_v22, %v271_v12  ;;  %v343_v25 = vsel %vm340_vm5, %v65_v46, %v270_v21 }
  0xc3   :  { %v174_v14 = vsel %vm165_vm12, %v712_v43, %v697_v11  ;;  %v175_v19 = vsel %vm165_vm12, %v697_v11, %v711_v18  ;;  %v349_v32 = vsel %vm345_vm15, %v344_v9, %v283_v4  ;;  %v348_v34 = vsel %vm345_vm15, %v343_v25, %v282_v1 }
  0xc4   :  { %v302_v41 = vrot.slane %v174_v14, 4  ;;  %v303_v23 = vrot.slane %v175_v19, 4 }
  0xc6   :  { %v359_v24 = vsel %vm355_vm14, %v354_v16, %v303_v23  ;;  %v358_v59 = vsel %vm355_vm14, %v353_v26, %v302_v41  ;;  %v561_v26 = vld [vmem:[%s1141_s1 + $0x8] sm:$0xff] }
  0xc7   :  { %v364_v33 = vsel %vm360_vm8, %v359_v24, %v315_v27  ;;  %v363_v35 = vsel %vm360_vm8, %v358_v59, %v314_v51  ;;  %v560_v59 = vld [vmem:[%s1141_s1] sm:$0xff] }
  0xc8   :  { %v382_v61 = vpack.c.bf16 %v364_v33, %v349_v32  ;;  %v381_v62 = vpack.c.bf16 %v363_v35, %v348_v34  ;;  %v564_v35 = vld [vmem:[%s1142_s2] sm:$0xff] }
  0xca   :  { %455 = vmatprep.subr.bf16.mxu1 %v382_v61 }
  0xcb   :  { %456 = vmatpush1.bf16.msra.mxu1 %v381_v62 }
  0xce   :  { %652 = vmatmul.mubr.msk.bf16.vlgmr.msra.gmra.mxu1 %vm394_vm0, %v717_v55 }
 0x17d   :  { %v1050_v15 = vpop.f32.mrf.mxu0 }
 0x17e   :  { %v503_v44 = vmul.f32 %v1050_v15, %v1050_v15 }
 0x17f   :  { %v1052_v27 = vpop.f32.mrf.mxu0 }
 0x180   :  { %v486_v30 = vadd.f32 %v1052_v27, %v1050_v15  ;;  %v504_v50 = vmul.f32 %v1052_v27, %v1052_v27 }
 0x181   :  { %v1054_v38 = vpop.f32.mrf.mxu0 }
 0x182   :  { %v507_v2 = vmul.f32 %v1054_v38, %v1054_v38  ;;  %v511_v60 = vadd.f32 %v504_v50, %v503_v44 }
 0x183   :  { %v1056_v40 = vpop.f32.mrf.mxu0 }
 0x184   :  { %v508_v29 = vmul.f32 %v1056_v40, %v1056_v40  ;;  %v491_v51 = vadd.f32 %v1056_v40, %v1054_v38 }
 0x186   :  { %v516_v56 = vadd.f32 %v508_v29, %v507_v2 }
 0x18e   :  { %v1062_v47 = vpop.f32.mrf.mxu1 }
 0x18f   :  { %v487_v55 = vadd.f32 %v486_v30, %v1062_v47  ;;  %v505_v52 = vmul.f32 %v1062_v47, %v1062_v47  ;;  %v565_v30 = vld [vmem:[%s1142_s2 + $0x8] sm:$0xff] }
 0x190   :  { %v1071_v3 = vpop.f32.mrf.mxu1 }
 0x191   :  { %v488_v53 = vadd.f32 %v487_v55, %v1071_v3  ;;  %v506_v0 = vmul.f32 %v1071_v3, %v1071_v3  ;;  %v512_v39 = vadd.f32 %v511_v60, %v505_v52 }
 0x192   :  { %v1078_v54 = vpop.f32.mrf.mxu1 }
 0x193   :  { %v509_v57 = vmul.f32 %v1078_v54, %v1078_v54  ;;  %489 = vadd.xlane.f32.xlu1 %v488_v53  ;;  %v492_v58 = vadd.f32 %v491_v51, %v1078_v54  ;;  %v513_v7 = vadd.f32 %v512_v39, %v506_v0 }
 0x194   :  { %v1083_v63 = vpop.f32.mrf.mxu1 }
 0x195   :  { %v510_v28 = vmul.f32 %v1083_v63, %v1083_v63  ;;  %v493_v17 = vadd.f32 %v492_v58, %v1083_v63  ;;  %v517_v22 = vadd.f32 %v516_v56, %v509_v57 }
 0x197   :  { %494 = vadd.xlane.f32.xlu0 %v493_v17  ;;  %v518_v6 = vadd.f32 %v517_v22, %v510_v28 }
 0x199   :  { %519 = vadd.xlane.f32.xlu1 %v518_v6 }
 0x19b   :  { %514 = vadd.xlane.f32.xlu0 %v513_v7 }
 0x21c   :  { %v490_v48 = vpop.xlane.xlu1 %489 }
 0x21d   :  { %v496_v49 = vadd.f32 %v490_v48, %v484_v8 }
 0x21f   :  { %499 = vst.msk [vmem:[#allocation2] sm:$0xff] %vm25_vm1, %v496_v49 }
 0x220   :  { %v495_v46 = vpop.xlane.xlu0 %494 }
 0x221   :  { %v497_v5 = vadd.f32 %v495_v46, %v485_v31 }
 0x222   :  { %v520_v20 = vpop.xlane.xlu1 %519 }
 0x223   :  { %500 = vst.msk [vmem:[#allocation2 + $0x8] sm:$0xff] %vm25_vm1, %v497_v5  ;;  %v522_v11 = vadd.f32 %v520_v20, %v502_v10 }
 0x224   :  { %v515_v21 = vpop.xlane.xlu0 %514 }
 0x225   :  { %524 = vst.msk [vmem:[#allocation3 + $0x8] sm:$0xff] %vm25_vm1, %v522_v11  ;;  %v521_v12 = vadd.f32 %v515_v21, %v501_v42 }
 0x226   :  { %v544_v45 = vld [vmem:[#allocation2] sm:$0xff] }
 0x227   :  { %523 = vst.msk [vmem:[#allocation3] sm:$0xff] %vm25_vm1, %v521_v12  ;;  %v546_v1 = vmul.f32 0.001953125, %v544_v45 }
 0x229   :  { %v552_v23 = vmul.f32 %v546_v1, %v546_v1 }
 0x22a   :  { %v545_v13 = vld [vmem:[#allocation2 + $0x8] sm:$0xff] }
 0x22b   :  { %v547_v36 = vmul.f32 0.001953125, %v545_v13 }
 0x22c   :  { %v549_v43 = vld [vmem:[#allocation3 + $0x8] sm:$0xff] }
 0x22d   :  { %v551_v18 = vmul.f32 0.001953125, %v549_v43  ;;  %v553_v4 = vmul.f32 %v547_v36, %v547_v36 }
 0x22e   :  { %v548_v14 = vld [vmem:[#allocation3] sm:$0xff] }
 0x22f   :  { %v555_v19 = vsub.f32 %v551_v18, %v553_v4  ;;  %v550_v41 = vmul.f32 0.001953125, %v548_v14 }
 0x231   :  { %v557_v9 = vadd.f32 1e-05, %v555_v19  ;;  %v554_v25 = vsub.f32 %v550_v41, %v552_v23 }
 0x233   :  { %718 = vrsqrt.f32 %v557_v9  ;;  %v556_v16 = vadd.f32 1e-05, %v554_v25 }
 0x235   :  { %720 = vrsqrt.f32 %v556_v16 }
 0x240   :  { %v719_v24 = vpop.eup %718 }
 0x241   :  { %v563_v32 = vmul.f32 %v719_v24, %v561_v26 }
 0x242   :  { %v721_v33 = vpop.eup %720 }
 0x243   :  { %585 = vperm.xlu1 %714, %v563_v32   ;;  %v562_v34 = vmul.f32 %v721_v33, %v560_v59  ;;  %v567_v37 = vmul.f32 %v563_v32, %v547_v36 }
 0x245   :  { %580 = vperm.xlu0 %713, %v562_v34   ;;  %v566_v61 = vmul.f32 %v562_v34, %v546_v1  ;;  %v569_v44 = vsub.f32 %v565_v30, %v567_v37 }
 0x247   :  { %v568_v62 = vsub.f32 %v564_v35, %v566_v61 }
 0x249   :  { %598 = vperm.xlu1 %714, %v568_v62  }
 0x24d   :  { %603 = vperm.xlu1 %714, %v569_v44  }
 0x2be   :  { %v586_v50 = vpop.permute.xlu1 %585 }
 0x2bf   :  { %v590_v0 = vmul.f32 %v586_v50, %v1054_v38  ;;  %v591_v28 = vmul.f32 %v586_v50, %v1056_v40  ;;  %v594_v17 = vmul.f32 %v586_v50, %v1078_v54  ;;  %v595_v22 = vmul.f32 %v586_v50, %v1083_v63 }
 0x2c0   :  { %v581_v2 = vpop.permute.xlu0 %580 }
 0x2c1   :  { %v588_v29 = vmul.f32 %v581_v2, %v1050_v15  ;;  %v589_v55 = vmul.f32 %v581_v2, %v1052_v27  ;;  %v592_v51 = vmul.f32 %v581_v2, %v1062_v47  ;;  %v593_v52 = vmul.f32 %v581_v2, %v1071_v3 }
 0x2c4   :  { %v599_v53 = vpop.permute.xlu1 %598 }
 0x2c5   :  { %v606_v56 = vadd.f32 %v599_v53, %v588_v29  ;;  %v607_v57 = vadd.f32 %v599_v53, %v589_v55  ;;  %v610_v58 = vadd.f32 %v599_v53, %v592_v51  ;;  %v611_v60 = vadd.f32 %v599_v53, %v593_v52 }
 0x2c7   :  { %v614_v15 = vmax.f32 %v606_v56, 0.0  ;;  %v615_v39 = vmax.f32 %v607_v57, 0.0  ;;  %v618_v27 = vmax.f32 %v610_v58, 0.0  ;;  %v619_v6 = vmax.f32 %v611_v60, 0.0 }
 0x2c8   :  { %v604_v47 = vpop.permute.xlu1 %603 }
 0x2c9   :  { %622 = vst [vmem:[%s1143_s5] sm:$0xff] %v614_v15  ;;  %623 = vst [vmem:[%s1143_s5 + $0x8] sm:$0xff] %v615_v39  ;;  %v608_v38 = vadd.f32 %v604_v47, %v590_v0  ;;  %v609_v40 = vadd.f32 %v604_v47, %v591_v28  ;;  %v612_v3 = vadd.f32 %v604_v47, %v594_v17 }
 0x2ca   :  { %626 = vst [vmem:[%s1143_s5 + $0x20] sm:$0xff] %v618_v27  ;;  %627 = vst [vmem:[%s1143_s5 + $0x28] sm:$0xff] %v619_v6  ;;  %v613_v54 = vadd.f32 %v604_v47, %v595_v22 }
 0x2cb   :  { %v616_v63 = vmax.f32 %v608_v38, 0.0  ;;  %v617_v7 = vmax.f32 %v609_v40, 0.0  ;;  %v620_v8 = vmax.f32 %v612_v3, 0.0 }
 0x2cc   :  { %v621_v48 = vmax.f32 %v613_v54, 0.0 }
 0x2cd   :  { %624 = vst [vmem:[%s1143_s5 + $0x10] sm:$0xff] %v616_v63  ;;  %625 = vst [vmem:[%s1143_s5 + $0x18] sm:$0xff] %v617_v7 }
 0x2ce   :  { %628 = vst [vmem:[%s1143_s5 + $0x30] sm:$0xff] %v620_v8  ;;  %629 = vst [vmem:[%s1143_s5 + $0x38] sm:$0xff] %v621_v48 }

</bundles_post_ra>
